<compile_context>
chip_gen: v6e
topology: v6e:2x2x1
jax: 0.10.0
libtpu: 0.0.40
codegen_flags: <defaults>
</compile_context>

<pallas_src>
import functools

import jax
import jax.numpy as jnp
from jax.experimental import pallas as pl
from jax.experimental.pallas import tpu as pltpu


def _copy_pad_kernel(x_hbm, o_hbm, zeros_vmem, copy_sem, tail_sem,
                     *, n_rows, n_padding):
    """Copy the N real rows HBM->HBM, then DMA a small zero tile into the tail."""
    # Bulk copy of the real rows, handled entirely by the DMA engine
    # (no VMEM round trip, no vld/vst slot pressure, no lane masking).
    body = pltpu.make_async_copy(x_hbm, o_hbm.at[pl.ds(0, n_rows)], copy_sem)
    body.start()

    # Zero only the n_padding tail rows via a tiny VMEM scratch (<= 9 x 3 f32).
    zeros_vmem[...] = jnp.zeros_like(zeros_vmem)
    tail = pltpu.make_async_copy(
        zeros_vmem, o_hbm.at[pl.ds(n_rows, n_padding)], tail_sem
    )
    tail.start()

    tail.wait()
    body.wait()


def _copy_only_kernel(x_hbm, o_hbm, copy_sem):
    """n_padding == 0 path: plain HBM->HBM copy."""
    cp = pltpu.make_async_copy(x_hbm, o_hbm, copy_sem)
    cp.start()
    cp.wait()


def d3_positional_encoder_c(x, n_padding=0):
    """Pallas equivalent of D3PositionalEncoderC.forward(x, n_padding)."""
    assert x.ndim == 2 and x.shape[1] == 3
    assert 0 <= n_padding <= 9
    n, c = x.shape
    out_n = n + n_padding
    out_shape = jax.ShapeDtypeStruct((out_n, c), x.dtype)

    if n_padding > 0:
        kernel = functools.partial(
            _copy_pad_kernel, n_rows=n, n_padding=n_padding
        )
        scratch_shapes = [
            pltpu.VMEM((n_padding, c), x.dtype),  # staging for the zero tail
            pltpu.SemaphoreType.DMA,              # bulk-copy completion
            pltpu.SemaphoreType.DMA,              # tail-copy completion
        ]
    else:
        kernel = _copy_only_kernel
        scratch_shapes = [pltpu.SemaphoreType.DMA]

    return pl.pallas_call(
        kernel,
        out_shape=out_shape,
        # Leave both operands in HBM; all data movement is explicit DMA.
        in_specs=[pl.BlockSpec(memory_space=pl.ANY)],
        out_specs=pl.BlockSpec(memory_space=pl.ANY),
        scratch_shapes=scratch_shapes,
    )(x)


if __name__ == "__main__":
    key = jax.random.PRNGKey(0)
    N = 8
    x = jax.random.normal(key, (N, 3), dtype=jnp.float32)
    n_padding = 3

    # Padded path.
    out = jax.block_until_ready(d3_positional_encoder_c(x, n_padding=n_padding))
    ref = jnp.concatenate([x, jnp.zeros((n_padding, 3), dtype=x.dtype)], axis=0)
    assert out.shape == (N + n_padding, 3)
    assert jnp.allclose(out, ref)

    # n_padding == 0 path (identity copy).
    out0 = jax.block_until_ready(d3_positional_encoder_c(x, n_padding=0))
    assert out0.shape == (N, 3)
    assert jnp.allclose(out0, x)

    print("KERNEL_OK")
</pallas_src>

<mosaic_0001>
module attributes {stable_mosaic.version = 11 : i64} {
  func.func @_copy_pad_kernel(%arg0: memref<8x3xf32, #tpu.memory_space<any>>, %arg1: memref<11x3xf32, #tpu.memory_space<any>>, %arg2: memref<3x3xf32, #tpu.memory_space<vmem>>, %arg3: memref<!tpu.dma_semaphore, #tpu.memory_space<semaphore_mem>>, %arg4: memref<!tpu.dma_semaphore, #tpu.memory_space<semaphore_mem>>) attributes {dimension_semantics = [], scalar_prefetch = 0 : i64, scratch_operands = 3 : i64, tpu.core_type = #tpu.core_type<tc>} {
    %c0_i32 = arith.constant 0 : i32
    %c0_i32_0 = arith.constant 0 : i32
    %0 = tpu.memref_slice %arg1[%c0_i32, %c0_i32_0] : memref<11x3xf32, #tpu.memory_space<any>> -> memref<8x3xf32, #tpu.memory_space<any>>
    tpu.enqueue_dma source(%arg0 : memref<8x3xf32, #tpu.memory_space<any>>) target(%0 : memref<8x3xf32, #tpu.memory_space<any>>) target_semaphore(%arg3 : memref<!tpu.dma_semaphore, #tpu.memory_space<semaphore_mem>>)
    %cst = arith.constant 0.000000e+00 : f32
    %1 = vector.broadcast %cst : f32 to vector<3x3xf32>
    %c0 = arith.constant 0 : index
    %c0_1 = arith.constant 0 : index
    %2 = vector.load %arg2[%c0, %c0_1] : memref<3x3xf32, #tpu.memory_space<vmem>>, vector<3x3xf32>
    tpu.vector_store %arg2[%c0, %c0_1], %1 {strides = array<i32>} : memref<3x3xf32, #tpu.memory_space<vmem>>, vector<3x3xf32>,
    %c8_i32 = arith.constant 8 : i32
    %c0_i32_2 = arith.constant 0 : i32
    %3 = tpu.memref_slice %arg1[%c8_i32, %c0_i32_2] : memref<11x3xf32, #tpu.memory_space<any>> -> memref<3x3xf32, #tpu.memory_space<any>>
    tpu.enqueue_dma source(%arg2 : memref<3x3xf32, #tpu.memory_space<vmem>>) target(%3 : memref<3x3xf32, #tpu.memory_space<any>>) target_semaphore(%arg4 : memref<!tpu.dma_semaphore, #tpu.memory_space<semaphore_mem>>)
    %c8_i32_3 = arith.constant 8 : i32
    %c0_i32_4 = arith.constant 0 : i32
    %4 = tpu.memref_slice %arg1[%c8_i32_3, %c0_i32_4] : memref<11x3xf32, #tpu.memory_space<any>> -> memref<3x3xf32, #tpu.memory_space<any>>
    tpu.wait_dma2 semaphore(%arg4 : memref<!tpu.dma_semaphore, #tpu.memory_space<semaphore_mem>>) src(%arg2 : memref<3x3xf32, #tpu.memory_space<vmem>>) dst(%4 : memref<3x3xf32, #tpu.memory_space<any>>)
    %c0_i32_5 = arith.constant 0 : i32
    %c0_i32_6 = arith.constant 0 : i32
    %5 = tpu.memref_slice %arg1[%c0_i32_5, %c0_i32_6] : memref<11x3xf32, #tpu.memory_space<any>> -> memref<8x3xf32, #tpu.memory_space<any>>
    tpu.wait_dma2 semaphore(%arg3 : memref<!tpu.dma_semaphore, #tpu.memory_space<semaphore_mem>>) src(%arg0 : memref<8x3xf32, #tpu.memory_space<any>>) dst(%5 : memref<8x3xf32, #tpu.memory_space<any>>)
    return
  }
}

</mosaic_0001>

<bundles_post_ra>
// kernel: tpu_custom_call.1
= control target key start
LH: loop header
LB: loop body
LE: loop exit
PB: predicated region body
PF: predicated region fallthrough
CT: control target
= control target key end

     0   :  { %s164_s0 = inlined_call_operand.vmem [shape: f32[8,3], index: 0, kind: input, shape index: {}]   ;;  %s165_s1 = inlined_call_operand.vmem [shape: f32[11,3], index: 1, kind: output, shape index: {}]  }
   0x1   :  { %v39_v0 = vld [vmem:[%s164_s0] sm:$0xff] }
   0x2   :  { %40 = vst [vmem:[%s165_s1] sm:$0xff] %v39_v0 }
   0x3   :  { %48 = vsyncadd [#allocation3], 128  ;;  %vm49_vm0 = vcmask 18432   ;;  %v144_v1 = vmov 0.0  }
   0x4   :  { %50 = vst.msk [vmem:[#allocation2] sm:$0x7] %vm49_vm0, %v144_v1 }
   0xb   :  { %v70_v2 = vld [vmem:[#allocation2] sm:$0x7] }
   0xc   :  { %136 = vst [vmem:[%s165_s1 + $0x8] sm:$0x7] %v70_v2 }
   0xd   :  { %97 = vsyncadd [#allocation4], 48 }
   0xe   :  { %140 = dma.done.wait [#allocation4], 48 }
   0xf   :  { %141 = vsyncadd [#allocation4], 4294967248 }
  0x10   :  { %142 = dma.done.wait [#allocation3], 128 }
  0x11   :  { %143 = vsyncadd [#allocation3], 4294967168 }
  0x12   :  { %104 = vsyncmov [#allocation3] }
  0x15   :  { %s105_s0 = vpop.sfrf %104 }
  0x16   :  { %p137_p0 = scmp.ne.s32.totalorder %s105_s0, 0 }
  0x18   :  { %109 = shalt.err (%p137_p0)  }
  0x19   :  { %110 = vsyncmov [#allocation4] }
  0x1c   :  { %s111_s12 = vpop.sfrf %110 }
  0x1d   :  { %p138_p1 = scmp.ne.s32.totalorder %s111_s12, 0 }
  0x1f   :  { %115 = shalt.err (%p138_p1)  }

</bundles_post_ra>
